<compile_context>
chip_gen: v6e
topology: v6e:2x2x1
jax: 0.10.0
libtpu: 0.0.40
codegen_flags: <defaults>
</compile_context>

<pallas_src>
import functools
import math

import jax
import jax.numpy as jnp
from jax.experimental import pallas as pl
from jax.experimental.pallas import tpu as pltpu

_LANES = 128
_SUBLANES = 8
_MAX_ROW_TILE = 512                 # 512*128*4B = 256 KiB per input block
_VMEM_LIMIT = 8 * 1024 * 1024       # modest cap; real footprint is well below


def _round_up(a, b):
    return (a + b - 1) // b * b


# --------------------------- fused loss-sum kernel ---------------------------
_CALL_CACHE = {}


def _loss_sum_call(n_rows, row_tile, gan_type, target_val, n_valid):
    """pallas_call computing sum_i per_element_loss(x_i) over n_valid elements."""
    key = (n_rows, row_tile, gan_type, float(target_val), n_valid)
    if key in _CALL_CACHE:
        return _CALL_CACHE[key]

    grid = n_rows // row_tile

    def kernel(x_ref, o_ref, acc_ref):
        step = pl.program_id(0)

        @pl.when(step == 0)
        def _():
            acc_ref[...] = jnp.zeros_like(acc_ref)

        x = x_ref[...].astype(jnp.float32)                       # (row_tile, 128)

        # mask out the zero-padding at the tail of the flattened input
        row_ids = jax.lax.broadcasted_iota(jnp.int32, x.shape, 0)
        lane_ids = jax.lax.broadcasted_iota(jnp.int32, x.shape, 1)
        elem_idx = (step * row_tile + row_ids) * _LANES + lane_ids
        valid = elem_idx < n_valid

        if gan_type in ("gan", "ragan"):
            # numerically-stable BCE-with-logits against a constant target y
            y = jnp.float32(target_val)
            per = (jnp.maximum(x, 0.0) - x * y
                   + jnp.log(1.0 + jnp.exp(-jnp.abs(x))))
        elif gan_type == "lsgan":
            d = x - jnp.float32(target_val)
            per = d * d
        else:  # 'wgan-gp' : just a mean; the +/- sign is applied outside
            per = x

        per = jnp.where(valid, per, 0.0)
        # sublane reduce per step; keep a lane-wide partial-sum accumulator
        acc_ref[...] += jnp.sum(per, axis=0, keepdims=True)       # (1, 128)

        @pl.when(step == pl.num_programs(0) - 1)
        def _():
            o_ref[...] = jnp.sum(acc_ref[...], axis=1, keepdims=True)  # (1, 1)

    call = pl.pallas_call(
        kernel,
        out_shape=jax.ShapeDtypeStruct((1, 1), jnp.float32),
        grid=(grid,),
        in_specs=[pl.BlockSpec((row_tile, _LANES), lambda i: (i, 0))],
        out_specs=pl.BlockSpec((1, 1), lambda i: (0, 0)),
        scratch_shapes=[pltpu.VMEM((1, _LANES), jnp.float32)],
        compiler_params=pltpu.CompilerParams(
            dimension_semantics=("arbitrary",),      # reduction axis
            vmem_limit_bytes=_VMEM_LIMIT),
    )
    _CALL_CACHE[key] = call
    return call


# --------------------------------- wrapper -----------------------------------
@functools.partial(
    jax.jit,
    static_argnames=("gan_type", "target_is_real",
                     "real_label_val", "fake_label_val"))
def gan_loss(x, gan_type, target_is_real,
             real_label_val=1.0, fake_label_val=0.0):
    gan_type = gan_type.lower()
    if gan_type not in ("gan", "ragan", "lsgan", "wgan-gp"):
        raise NotImplementedError(
            "GAN type [{:s}] is not found".format(gan_type))

    # number of elements (static under jit)
    n = 1
    for d in x.shape:
        n *= d

    # flatten to a lane-dense (rows, 128) layout, row-tiled grid
    rows = max(_round_up(pl.cdiv(n, _LANES), _SUBLANES), _SUBLANES)
    row_tile = min(_MAX_ROW_TILE, rows)
    rows = _round_up(rows, row_tile)

    flat = jnp.ravel(x).astype(jnp.float32)
    flat = jnp.pad(flat, (0, rows * _LANES - n))
    x2d = flat.reshape(rows, _LANES)

    if gan_type == "wgan-gp":
        target_val = 0.0                      # unused in the kernel
        sign = -1.0 if target_is_real else 1.0
    else:
        target_val = float(real_label_val if target_is_real else fake_label_val)
        sign = 1.0

    total = _loss_sum_call(rows, row_tile, gan_type, target_val, n)(x2d)[0, 0]
    return total * (sign / n)


class GANLoss:
    """Pallas/JAX port of the PyTorch GANLoss module (same constructor args)."""

    def __init__(self, gan_type, real_label_val=1.0, fake_label_val=0.0):
        self.gan_type = gan_type.lower()
        self.real_label_val = float(real_label_val)
        self.fake_label_val = float(fake_label_val)
        if self.gan_type not in ("gan", "ragan", "lsgan", "wgan-gp"):
            raise NotImplementedError(
                "GAN type [{:s}] is not found".format(self.gan_type))

    def __call__(self, input, target_is_real):
        return gan_loss(input, self.gan_type, bool(target_is_real),
                        self.real_label_val, self.fake_label_val)


# ------------------------------ pure-JAX reference ----------------------------
def _gan_loss_ref(x, gan_type, target_is_real, real=1.0, fake=0.0):
    x = x.astype(jnp.float32)
    if gan_type == "wgan-gp":
        m = jnp.mean(x)
        return -m if target_is_real else m
    y = real if target_is_real else fake
    if gan_type in ("gan", "ragan"):
        return jnp.mean(jnp.maximum(x, 0.0) - x * y
                        + jnp.log(1.0 + jnp.exp(-jnp.abs(x))))
    return jnp.mean((x - y) ** 2)


# ----------------------------------- main -------------------------------------
if __name__ == "__main__":
    key = jax.random.PRNGKey(0)
    # discriminator logits, e.g. a patch-GAN output: (N, C, H, W)
    x = jax.random.normal(key, (2, 4, 16, 16), jnp.float32) * 2.0

    vals = []
    for gan_type in ("gan", "lsgan", "wgan-gp"):
        crit = GANLoss(gan_type)
        for target_is_real in (True, False):
            got = jax.block_until_ready(crit(x, target_is_real))
            want = _gan_loss_ref(x, gan_type, target_is_real)
            assert jnp.allclose(got, want, rtol=1e-5, atol=1e-5), (
                gan_type, target_is_real, float(got), float(want))
            vals.append(float(got))

    assert all(math.isfinite(v) for v in vals)
    print("KERNEL_OK")
</pallas_src>

<mosaic_0001>
module attributes {stable_mosaic.version = 11 : i64} {
  func.func @kernel(%arg0: i32, %arg1: memref<16x128xf32, #tpu.memory_space<vmem>>, %arg2: memref<1x1xf32, #tpu.memory_space<vmem>>, %arg3: memref<1x128xf32, #tpu.memory_space<vmem>>) attributes {dimension_semantics = [#tpu.dimension_semantics<arbitrary>], iteration_bounds = array<i64: 1>, scalar_prefetch = 0 : i64, scratch_operands = 1 : i64, tpu.core_type = #tpu.core_type<tc>, window_params = [{transform_indices = @transform_0, window_bounds = array<i64: 16, 128>}, {pipeline_mode = #tpu.pipeline_mode<synchronous>, transform_indices = @transform_1, window_bounds = array<i64: 1, 1>}]} {
    %c0_i32 = arith.constant 0 : i32
    %0 = arith.cmpi eq, %arg0, %c0_i32 : i32
    %1 = arith.extui %0 : i1 to i32
    %c0_i32_0 = arith.constant 0 : i32
    %2 = arith.cmpi ne, %1, %c0_i32_0 : i32
    scf.if %2 {
      %cst_13 = arith.constant 0.000000e+00 : f32
      %37 = vector.broadcast %cst_13 : f32 to vector<1x128xf32>
      %c0_14 = arith.constant 0 : index
      %c0_15 = arith.constant 0 : index
      %38 = vector.load %arg3[%c0_14, %c0_15] : memref<1x128xf32, #tpu.memory_space<vmem>>, vector<1x128xf32>
      tpu.vector_store %arg3[%c0_14, %c0_15], %37 {strides = array<i32>} : memref<1x128xf32, #tpu.memory_space<vmem>>, vector<1x128xf32>,
    } else {
    }
    %c0 = arith.constant 0 : index
    %c0_1 = arith.constant 0 : index
    %3 = vector.load %arg1[%c0, %c0_1] : memref<16x128xf32, #tpu.memory_space<vmem>>, vector<16x128xf32>
    %4 = tpu.iota {dimensions = array<i32: 0>} : vector<16x128xi32>
    %5 = tpu.iota {dimensions = array<i32: 1>} : vector<16x128xi32>
    %c16_i32 = arith.constant 16 : i32
    %6 = arith.muli %arg0, %c16_i32 : i32
    %7 = vector.broadcast %6 : i32 to vector<16x128xi32>
    %8 = arith.addi %7, %4 : vector<16x128xi32>
    %c128_i32 = arith.constant 128 : i32
    %9 = vector.broadcast %c128_i32 : i32 to vector<16x128xi32>
    %10 = arith.muli %8, %9 : vector<16x128xi32>
    %11 = arith.addi %10, %5 : vector<16x128xi32>
    %c2048_i32 = arith.constant 2048 : i32
    %12 = vector.broadcast %c2048_i32 : i32 to vector<16x128xi32>
    %13 = arith.cmpi slt, %11, %12 : vector<16x128xi32>
    %cst = arith.constant 0.000000e+00 : f32
    %14 = vector.broadcast %cst : f32 to vector<16x128xf32>
    %15 = arith.maximumf %3, %14 : vector<16x128xf32>
    %cst_2 = arith.constant 1.000000e+00 : f32
    %16 = vector.broadcast %cst_2 : f32 to vector<16x128xf32>
    %17 = arith.mulf %3, %16 : vector<16x128xf32>
    %18 = arith.subf %15, %17 : vector<16x128xf32>
    %19 = math.absf %3 : vector<16x128xf32>
    %cst_3 = arith.constant 0.000000e+00 : f32
    %20 = vector.broadcast %cst_3 : f32 to vector<16x128xf32>
    %21 = arith.subf %20, %19 : vector<16x128xf32>
    %22 = math.exp %21 : vector<16x128xf32>
    %cst_4 = arith.constant 1.000000e+00 : f32
    %23 = vector.broadcast %cst_4 : f32 to vector<16x128xf32>
    %24 = arith.addf %23, %22 : vector<16x128xf32>
    %25 = math.log %24 : vector<16x128xf32>
    %26 = arith.addf %18, %25 : vector<16x128xf32>
    %cst_5 = arith.constant 0.000000e+00 : f32
    %27 = vector.broadcast %cst_5 : f32 to vector<16x128xf32>
    %28 = arith.select %13, %26, %27 : vector<16x128xi1>, vector<16x128xf32>
    %c0_6 = arith.constant 0 : index
    %c0_7 = arith.constant 0 : index
    %29 = vector.load %arg3[%c0_6, %c0_7] : memref<1x128xf32, #tpu.memory_space<vmem>>, vector<1x128xf32>
    %cst_8 = arith.constant dense<0.000000e+00> : vector<128xf32>
    %30 = vector.multi_reduction <add>, %28, %cst_8 [0] : vector<16x128xf32> to vector<128xf32>
    %31 = vector.shape_cast %30 : vector<128xf32> to vector<1x128xf32>
    %32 = arith.addf %29, %31 : vector<1x128xf32>
    %c0_9 = arith.constant 0 : index
    %c0_10 = arith.constant 0 : index
    %33 = vector.load %arg3[%c0_9, %c0_10] : memref<1x128xf32, #tpu.memory_space<vmem>>, vector<1x128xf32>
    tpu.vector_store %arg3[%c0_9, %c0_10], %32 {strides = array<i32>} : memref<1x128xf32, #tpu.memory_space<vmem>>, vector<1x128xf32>,
    %c0_i32_11 = arith.constant 0 : i32
    %34 = arith.cmpi eq, %arg0, %c0_i32_11 : i32
    %35 = arith.extui %34 : i1 to i32
    %c0_i32_12 = arith.constant 0 : i32
    %36 = arith.cmpi ne, %35, %c0_i32_12 : i32
    scf.if %36 {
      %c0_13 = arith.constant 0 : index
      %c0_14 = arith.constant 0 : index
      %37 = vector.load %arg3[%c0_13, %c0_14] : memref<1x128xf32, #tpu.memory_space<vmem>>, vector<1x128xf32>
      %cst_15 = arith.constant dense<0.000000e+00> : vector<1xf32>
      %38 = vector.multi_reduction <add>, %37, %cst_15 [1] : vector<1x128xf32> to vector<1xf32>
      %39 = vector.shape_cast %38 : vector<1xf32> to vector<1x1xf32>
      %c0_16 = arith.constant 0 : index
      %c0_17 = arith.constant 0 : index
      %40 = vector.load %arg2[%c0_16, %c0_17] : memref<1x1xf32, #tpu.memory_space<vmem>>, vector<1x1xf32>
      tpu.vector_store %arg2[%c0_16, %c0_17], %39 {strides = array<i32>} : memref<1x1xf32, #tpu.memory_space<vmem>>, vector<1x1xf32>,
    } else {
    }
    return
  }
  func.func @transform_0(%arg0: i32) -> (i32, i32) {
    %c0_i32 = arith.constant 0 : i32
    %c0_i32_0 = arith.constant 0 : i32
    return %arg0, %c0_i32 : i32, i32
  }
  func.func @transform_1(%arg0: i32) -> (i32, i32) {
    %c0_i32 = arith.constant 0 : i32
    %c0_i32_0 = arith.constant 0 : i32
    %c0_i32_1 = arith.constant 0 : i32
    return %c0_i32, %c0_i32_0 : i32, i32
  }
}

</mosaic_0001>

<bundles_post_ra>
// kernel: gan_loss.1
= control target key start
LH: loop header
LB: loop body
LE: loop exit
PB: predicated region body
PF: predicated region fallthrough
CT: control target
= control target key end

     0   :  { %s140_s0 = inlined_call_operand.vmem [shape: f32[16,128], index: 0, kind: input, shape index: {}]   ;;  %s141_s1 = inlined_call_operand.hbm [shape: f32[1,1], index: 1, kind: output, shape index: {}]  }
   0x1   :  { %v14_v0 = vld [vmem:[%s140_s0] sm:$0xff]  ;;  %v15_v1 = vld [vmem:[%s140_s0 + $0x8] sm:$0xff] }
   0x2   :  { %6 = vsyncpa [#allocation4], 0  ;;  %v119_v2 = vmov 0.0   ;;  %v35_v3 = vand.u32 2147483647, %v14_v0  ;;  %v16_v9 = vlaneseq  ;;  %v31_v19 = vmax.f32 %v14_v0, 0.0 }
   0x3   :  { %13 = vst [vmem:[#allocation2] sm:$0x1] %v119_v2  ;;  %v36_v4 = vand.u32 2147483647, %v15_v1  ;;  %v32_v20 = vmax.f32 %v15_v1, 0.0  ;;  %vm67_vm2 = vcmask 1040384  }
   0x4   :  { %v37_v5 = vsub.f32 0.0, %v35_v3  ;;  %v17_v14 = vshrl.u32 %v16_v9, 7  ;;  %v20_v16 = vand.u32 127, %v16_v9  ;;  %v33_v23 = vsub.f32 %v31_v19, %v14_v0  ;;  %s120_s0 = smov [#allocation3]  }
   0x5   :  { %v38_v6 = vsub.f32 0.0, %v36_v4  ;;  %v34_v25 = vsub.f32 %v32_v20, %v15_v1  ;;  %s79_s10 = sshll.u32 %s120_s0, 4  ;;  %vm71_vm3 = vcmask 0   ;;  %s80_s10 = int_to_ptr.vmem [resolvable:$true] %s79_s10 }
   0x6   :  { %v39_v7 = vmul.f32 1.442695, %v37_v5  ;;  %v18_v15 = vadd.s32 8, %v17_v14  ;;  %v25_v17 = vmul.u32 128, %v17_v14  ;;  %s97_s11 = scalar_lea.vmem %s80_s10, 16  ;;  %s101_s12 = scalar_lea.vmem %s80_s10, 32 }
   0x7   :  { %v41_v8 = vmul.f32 1.442695, %v38_v6  ;;  %p98_p0 = scmp.ne.s32.totalorder %s80_s10, %s97_s11  ;;  %p102_p1 = scmp.lt.s32.totalorder %s80_s10, %s80_s10 }
   0x8   :  { %89 = vpow2.f32 %v39_v7  ;;  %v26_v18 = vmul.u32 128, %v18_v15  ;;  %v27_v21 = vadd.s32 %v25_v17, %v20_v16  ;;  %p103_p2 = scmp.lt.s32.totalorder %s101_s12, %s97_s11 }
   0x9   :  { %91 = vpow2.f32 %v41_v8 }
   0xa   :  { %v28_v22 = vadd.s32 %v26_v18, %v20_v16  ;;  %vm29_vm0 = vcmp.lt.s32.totalorder %v27_v21, 2048  ;;  %v53_v39 = vld [vmem:[#allocation2] sm:$0x1]  ;;  %p104_p3 = por %p103_p2, %p102_p1 }
   0xc   :  { %vm30_vm1 = vcmp.lt.s32.totalorder %v28_v22, 2048  ;;  %p105_p4 = pnand %p104_p3, %p98_p0 }
  0x15   :  { %v90_v10 = vpop.eup %89 }
  0x16   :  { %v92_v11 = vpop.eup %91  ;;  %v43_v12 = vadd.f32 1.0, %v90_v10 }
  0x17   :  { %v44_v13 = vadd.f32 1.0, %v92_v11 }
  0x18   :  { %93 = vlog2.f32 %v43_v12 }
  0x19   :  { %95 = vlog2.f32 %v44_v13 }
  0x25   :  { %v94_v24 = vpop.eup %93 }
  0x26   :  { %v96_v26 = vpop.eup %95  ;;  %v46_v27 = vmul.f32 0.6931472, %v94_v24 }
  0x27   :  { %v48_v28 = vmul.f32 0.6931472, %v96_v26 }
  0x28   :  { %v49_v29 = vadd.f32 %v46_v27, %v33_v23 }
  0x29   :  { %v50_v30 = vadd.f32 %v48_v28, %v34_v25 }
  0x2a   :  { %v51_v31 = vsel %vm29_vm0, %v49_v29, 0.0 }
  0x2b   :  { %v52_v32 = vsel %vm30_vm1, %v50_v30, 0.0 }
  0x2c   :  { %v54_v33 = vadd.f32 %v52_v32, %v51_v31 }
  0x2e   :  { %v55_v34 = vrot.slane %v54_v33, 4 }
  0x30   :  { %v56_v35 = vadd.f32 %v55_v34, %v54_v33 }
  0x32   :  { %v57_v36 = vrot.slane %v56_v35, 2 }
  0x34   :  { %v58_v37 = vadd.f32 %v57_v36, %v56_v35 }
  0x36   :  { %v59_v38 = vrot.slane %v58_v37, 1 }
  0x38   :  { %v60_v40 = vadd.f32 %v59_v38, %v58_v37 }
  0x3a   :  { %v61_v41 = vadd.f32 %v60_v40, %v53_v39 }
  0x3c   :  { %62 = vst [vmem:[#allocation2] sm:$0x1] %v61_v41 }
  0x43   :  { %v66_v42 = vld [vmem:[#allocation2] sm:$0x1] }
  0x44   :  { %v68_v43 = vsel %vm67_vm2, %v66_v42, 0.0 }
  0x45   :  { %69 = vadd.xlane.f32.xlu0 %v68_v43 }
  0xce   :  { %v70_v44 = vpop.xlane.xlu0 %69 }
  0xcf   :  { %72 = vst.msk [vmem:[#allocation3] sm:$0x1] %vm71_vm3, %v70_v44 }
  0xd0   :  { %108 = shalt.err (!%p105_p4)
}
  0xd1   :  { %82 = dma.vmem_to_hbm [thread:$0]  %s80_s10, 16, %s141_s1, [#allocation4]  }
  0xd2   :  { %117 = dma.done.wait [#allocation4], 16  }
  0xd3   :  { %118 = vsyncadd [#allocation4], 4294967280 }
  0xd4   :  { %86 = vsyncpa [#allocation4], 1 }

</bundles_post_ra>
